<compile_context>
chip_gen: v7x
topology: tpu7x:2x2x1
jax: 0.10.0
libtpu: 0.0.40
codegen_flags: <defaults>
</compile_context>

<pallas_src>
import functools

import jax
import jax.numpy as jnp
from jax import lax
from jax.experimental import pallas as pl
from jax.experimental.pallas import tpu as pltpu


# --------------------------------------------------------------------------
# Pass 1: fused QKV projection.
# --------------------------------------------------------------------------
def _qkv_proj_kernel(x_ref, wqkv_ref, bqkv_ref, q_ref, k_ref, v_ref):
    """One (Tr, E) row slab per grid step; q comes out pre-scaled."""
    E = q_ref.shape[-1]
    w = wqkv_ref[...]                                   # (E, 3E), MXU dtype
    qkv = jnp.dot(x_ref[...].astype(w.dtype), w,
                  preferred_element_type=jnp.float32) + bqkv_ref[...]
    q_ref[...] = qkv[:, :E].astype(q_ref.dtype)
    k_ref[...] = qkv[:, E:2 * E].astype(k_ref.dtype)
    v_ref[...] = qkv[:, 2 * E:].astype(v_ref.dtype)


# --------------------------------------------------------------------------
# Pass 2: flash-style attention (online softmax over KV tiles) + projection.
# --------------------------------------------------------------------------
def _attn_kernel(q_ref, k_ref, v_ref, wp_ref, bp_ref, o_ref, *,
                 num_heads, kv_tile):
    """One (Tq, E) query tile of one batch element per grid step."""
    Tq, E = q_ref.shape
    N = k_ref.shape[0]
    H = num_heads
    d = E // H
    n_kv = N // kv_tile
    cdt = q_ref.dtype                                   # MXU operand dtype

    q = q_ref[...]                                      # (Tq, E), pre-scaled

    head_outs = []
    for h in range(H):                                  # static head loop
        sl = slice(h * d, (h + 1) * d)                  # static lane slice
        qh = q[:, sl]                                   # (Tq, d)

        def kv_step(j, carry, sl=sl, qh=qh):
            m_prev, l_prev, acc_prev = carry
            start = pl.multiple_of(j * kv_tile, kv_tile)
            ks = k_ref[pl.ds(start, kv_tile), sl]       # (Tkv, d)
            vs = v_ref[pl.ds(start, kv_tile), sl]       # (Tkv, d)
            # e[i, j] = qh[i, :] . ks[j, :]   (no explicit transpose)
            e = lax.dot_general(qh, ks, (((1,), (1,)), ((), ())),
                                preferred_element_type=jnp.float32)
            m_new = jnp.maximum(m_prev, jnp.max(e, axis=-1, keepdims=True))
            alpha = jnp.exp(m_prev - m_new)
            p = jnp.exp(e - m_new)                      # unnormalized (deferred)
            l_new = alpha * l_prev + jnp.sum(p, axis=-1, keepdims=True)
            acc_new = alpha * acc_prev + jnp.dot(
                p.astype(cdt), vs, preferred_element_type=jnp.float32)
            return m_new, l_new, acc_new

        m0 = jnp.full((Tq, 1), -jnp.inf, dtype=jnp.float32)
        l0 = jnp.zeros((Tq, 1), dtype=jnp.float32)
        a0 = jnp.zeros((Tq, d), dtype=jnp.float32)
        _, l_f, acc_f = lax.fori_loop(0, n_kv, kv_step, (m0, l0, a0),
                                      unroll=n_kv <= 2)
        # Deferred softmax normalization: one (Tq, d) multiply per head.
        oh = acc_f * pl.reciprocal(l_f, approx=True)
        head_outs.append(oh.astype(cdt))

    # Concatenate heads (static lane offsets) -> single full-depth projection.
    o_cat = jnp.concatenate(head_outs, axis=-1)         # (Tq, E)
    y = jnp.dot(o_cat, wp_ref[...],
                preferred_element_type=jnp.float32) + bp_ref[...]
    o_ref[...] = y.astype(o_ref.dtype)


# --------------------------------------------------------------------------
# Wrapper helpers.
# --------------------------------------------------------------------------
def _pick_tile(n, cap, align=8):
    """Largest divisor of n that is <= cap and (multiple of align or == n)."""
    best = None
    for t in range(1, n + 1):
        if n % t == 0 and t <= cap and (t % align == 0 or t == n):
            best = t
    return best if best is not None else n


def _vmem_limit(est_bytes):
    """Per-generation scoped-VMEM limit: enough for the tiles, below physical."""
    try:
        phys = int(pltpu.get_tpu_info().vmem_capacity_bytes)
    except Exception:
        phys = 64 << 20            # conservative fallback (v7x physical VMEM)
    cap = max(32 << 20, phys - (8 << 20))
    want = 2 * int(est_bytes) + (8 << 20)
    return int(max(32 << 20, min(want, cap, 112 << 20)))


def pack_mha_params(params, *, emb_size, mxu_dtype=jnp.bfloat16):
    """One-time weight transform: pack QKV, fold 1/sqrt(emb_size) into wq/bq,
    pre-cast matmul weights to the MXU operand dtype (bf16 by default on all
    generations, including v5e). Biases stay f32."""
    E = emb_size
    scale = 1.0 / (float(E) ** 0.5)
    wqkv = jnp.concatenate(
        [params["wq"] * scale, params["wk"], params["wv"]], axis=1)
    bqkv = jnp.concatenate(
        [params["bq"] * scale, params["bk"], params["bv"]], axis=1)
    return {
        "wqkv": wqkv.astype(mxu_dtype),
        "bqkv": bqkv.astype(jnp.float32),
        "wp": params["wp"].astype(mxu_dtype),
        "bp": params["bp"].astype(jnp.float32),
    }


def multi_head_attention(x, packed, *, emb_size, num_heads,
                         q_tile=None, kv_tile=None, row_tile=None):
    """x: (B, N, E) float32. packed: output of pack_mha_params."""
    B, N, E = x.shape
    H = num_heads
    assert E == emb_size and E % H == 0
    cdt = packed["wqkv"].dtype
    isz = jnp.dtype(cdt).itemsize

    R = B * N
    Tr = row_tile if row_tile is not None else _pick_tile(R, 512)
    Tq = q_tile if q_tile is not None else _pick_tile(N, 256)
    Tkv = kv_tile if kv_tile is not None else _pick_tile(N, 512)
    assert R % Tr == 0 and N % Tq == 0 and N % Tkv == 0

    # ---------------- Pass 1: fused QKV projection ----------------
    est1 = (2 * Tr * E * 4                # x slab, double-buffered, f32
            + 3 * E * E * isz             # wqkv, single-buffered
            + 3 * E * 4                   # bqkv
            + 3 * 2 * Tr * E * isz        # q/k/v out, double-buffered
            + 4 * Tr * 3 * E)             # f32 qkv temporary
    cost1 = pl.CostEstimate(
        flops=int(2 * R * E * 3 * E),
        transcendentals=0,
        bytes_accessed=int(4 * R * E + 3 * E * E * isz + 3 * E * 4
                           + 3 * R * E * isz))
    q_flat, k_flat, v_flat = pl.pallas_call(
        _qkv_proj_kernel,
        out_shape=tuple(jax.ShapeDtypeStruct((R, E), cdt) for _ in range(3)),
        grid_spec=pltpu.PrefetchScalarGridSpec(
            num_scalar_prefetch=0,
            grid=(R // Tr,),
            in_specs=[
                pl.BlockSpec((Tr, E), lambda i: (i, 0)),
                pl.BlockSpec((E, 3 * E), lambda i: (0, 0),
                             pipeline_mode=pl.Buffered(1)),
                pl.BlockSpec((1, 3 * E), lambda i: (0, 0),
                             pipeline_mode=pl.Buffered(1)),
            ],
            out_specs=[pl.BlockSpec((Tr, E), lambda i: (i, 0)),
                       pl.BlockSpec((Tr, E), lambda i: (i, 0)),
                       pl.BlockSpec((Tr, E), lambda i: (i, 0))],
        ),
        compiler_params=pltpu.CompilerParams(
            dimension_semantics=("parallel",),
            vmem_limit_bytes=_vmem_limit(est1)),
        cost_estimate=cost1,
    )(x.reshape(R, E), packed["wqkv"], packed["bqkv"])
    q = q_flat.reshape(B, N, E)
    k = k_flat.reshape(B, N, E)
    v = v_flat.reshape(B, N, E)

    # -------- Pass 2: flash-style attention + output projection --------
    est2 = (2 * Tq * E * isz              # q tile, double-buffered
            + 2 * 2 * N * E * isz         # K and V, double-buffered
            + E * E * isz + E * 4         # wp (single-buffered) + bp
            + 2 * Tq * E * 4              # output tile, double-buffered (f32)
            + 2 * Tq * Tkv * 4            # e / p online-softmax temporaries
            + 2 * Tq * E * 4)             # head outputs + accumulators
    cost2 = pl.CostEstimate(
        flops=int(4 * B * N * N * E + 2 * B * N * E * E),
        transcendentals=int(B * H * N * N),
        bytes_accessed=int(B * (N // Tq) * (Tq + 2 * N) * E * isz
                           + E * E * isz + E * 4 + 4 * B * N * E))
    kernel2 = functools.partial(_attn_kernel, num_heads=H, kv_tile=Tkv)
    return pl.pallas_call(
        kernel2,
        out_shape=jax.ShapeDtypeStruct((B, N, E), x.dtype),
        grid_spec=pltpu.PrefetchScalarGridSpec(
            num_scalar_prefetch=0,
            grid=(B, N // Tq),
            in_specs=[
                pl.BlockSpec((None, Tq, E), lambda b, i: (b, i, 0)),   # q tile
                pl.BlockSpec((None, N, E), lambda b, i: (b, 0, 0)),    # K (full seq)
                pl.BlockSpec((None, N, E), lambda b, i: (b, 0, 0)),    # V (full seq)
                pl.BlockSpec((E, E), lambda b, i: (0, 0),
                             pipeline_mode=pl.Buffered(1)),            # wp
                pl.BlockSpec((1, E), lambda b, i: (0, 0),
                             pipeline_mode=pl.Buffered(1)),            # bp
            ],
            out_specs=pl.BlockSpec((None, Tq, E), lambda b, i: (b, i, 0)),
        ),
        compiler_params=pltpu.CompilerParams(
            dimension_semantics=("parallel", "parallel"),
            vmem_limit_bytes=_vmem_limit(est2)),
        cost_estimate=cost2,
    )(q, k, v, packed["wp"], packed["bp"])


# --------------------------------------------------------------------------
# Pure-JAX reference mirroring the PyTorch forward (eval mode, mask=None).
# --------------------------------------------------------------------------
def _reference(x, params, *, emb_size, num_heads):
    B, N, E = x.shape
    d = E // num_heads

    def lin(t, w, b):
        return t @ w + b                      # weights stored (in, out)

    def split_heads(t):                       # 'b n (h d) -> b h n d'
        return t.reshape(B, N, num_heads, d).transpose(0, 2, 1, 3)

    q = split_heads(lin(x, params["wq"], params["bq"]))
    k = split_heads(lin(x, params["wk"], params["bk"]))
    v = split_heads(lin(x, params["wv"], params["bv"]))
    energy = jnp.einsum('bhqd,bhkd->bhqk', q, k)
    att = jax.nn.softmax(energy / (emb_size ** 0.5), axis=-1)
    out = jnp.einsum('bhal,bhlv->bhav', att, v)
    out = out.transpose(0, 2, 1, 3).reshape(B, N, E)
    return lin(out, params["wp"], params["bp"])


if __name__ == "__main__":
    emb_size = 32
    num_heads = 4
    B, N = 2, 8

    key = jax.random.PRNGKey(0)
    keys = jax.random.split(key, 10)
    sc = 1.0 / (emb_size ** 0.5)

    # Deterministic synthetic parameters. Weights stored transposed: (in, out).
    params = {
        "wq": jax.random.uniform(keys[0], (emb_size, emb_size), jnp.float32, -sc, sc),
        "bq": jax.random.uniform(keys[1], (1, emb_size), jnp.float32, -sc, sc),
        "wk": jax.random.uniform(keys[2], (emb_size, emb_size), jnp.float32, -sc, sc),
        "bk": jax.random.uniform(keys[3], (1, emb_size), jnp.float32, -sc, sc),
        "wv": jax.random.uniform(keys[4], (emb_size, emb_size), jnp.float32, -sc, sc),
        "bv": jax.random.uniform(keys[5], (1, emb_size), jnp.float32, -sc, sc),
        "wp": jax.random.uniform(keys[6], (emb_size, emb_size), jnp.float32, -sc, sc),
        "bp": jax.random.uniform(keys[7], (1, emb_size), jnp.float32, -sc, sc),
    }

    x = jax.random.normal(keys[8], (B, N, emb_size), jnp.float32)
    ref = _reference(x, params, emb_size=emb_size, num_heads=num_heads)

    # f32 MXU operands: tight check (only approx-reciprocal / online-softmax drift).
    packed_f32 = pack_mha_params(params, emb_size=emb_size, mxu_dtype=jnp.float32)
    out = multi_head_attention(x, packed_f32, emb_size=emb_size, num_heads=num_heads)
    out = jax.block_until_ready(out)
    assert out.shape == (B, N, emb_size)
    assert jnp.allclose(out, ref, atol=5e-3, rtol=5e-3), "mismatch vs reference (f32)"

    # bf16 MXU operands (recommended default on v5e/v6e/v7x): looser check.
    packed_bf16 = pack_mha_params(params, emb_size=emb_size, mxu_dtype=jnp.bfloat16)
    out_bf16 = multi_head_attention(x, packed_bf16, emb_size=emb_size,
                                    num_heads=num_heads)
    out_bf16 = jax.block_until_ready(out_bf16)
    assert jnp.allclose(out_bf16, ref, atol=1e-1, rtol=1e-1), "mismatch vs reference (bf16)"

    print("KERNEL_OK")
</pallas_src>

<mosaic_0001>
module attributes {stable_mosaic.version = 11 : i64} {
  func.func @_qkv_proj_kernel(%arg0: i32, %arg1: memref<16x32xf32, #tpu.memory_space<vmem>>, %arg2: memref<32x96xf32, #tpu.memory_space<vmem>>, %arg3: memref<1x96xf32, #tpu.memory_space<vmem>>, %arg4: memref<16x32xf32, #tpu.memory_space<vmem>>, %arg5: memref<16x32xf32, #tpu.memory_space<vmem>>, %arg6: memref<16x32xf32, #tpu.memory_space<vmem>>) attributes {dimension_semantics = [#tpu.dimension_semantics<parallel>], iteration_bounds = array<i64: 1>, scalar_prefetch = 0 : i64, scratch_operands = 0 : i64, tpu.core_type = #tpu.core_type<tc>, window_params = [{transform_indices = @transform_0, window_bounds = array<i64: 16, 32>}, {pipeline_mode = #tpu.pipeline_mode<synchronous>, transform_indices = @transform_1, window_bounds = array<i64: 32, 96>}, {pipeline_mode = #tpu.pipeline_mode<synchronous>, transform_indices = @transform_2, window_bounds = array<i64: 1, 96>}, {transform_indices = @transform_3, window_bounds = array<i64: 16, 32>}, {transform_indices = @transform_4, window_bounds = array<i64: 16, 32>}, {transform_indices = @transform_5, window_bounds = array<i64: 16, 32>}]} {
    %c0 = arith.constant 0 : index
    %c0_0 = arith.constant 0 : index
    %0 = vector.load %arg2[%c0, %c0_0] : memref<32x96xf32, #tpu.memory_space<vmem>>, vector<32x96xf32>
    %c0_1 = arith.constant 0 : index
    %c0_2 = arith.constant 0 : index
    %1 = vector.load %arg1[%c0_1, %c0_2] : memref<16x32xf32, #tpu.memory_space<vmem>>, vector<16x32xf32>
    %cst = arith.constant dense<0.000000e+00> : vector<16x96xf32>
    %2 = tpu.matmul %1, %0, %cst {dimension_numbers = #tpu.dot_dimension_numbers<[1], [0], [0], [1], [0, 0, 1, 1], [], []>} : vector<16x32xf32>, vector<32x96xf32>, vector<16x96xf32> -> vector<16x96xf32>
    %c0_3 = arith.constant 0 : index
    %c0_4 = arith.constant 0 : index
    %3 = vector.load %arg3[%c0_3, %c0_4] : memref<1x96xf32, #tpu.memory_space<vmem>>, vector<1x96xf32>
    %4 = vector.broadcast %3 : vector<1x96xf32> to vector<16x96xf32>
    %5 = arith.addf %2, %4 : vector<16x96xf32>
    %6 = vector.extract_strided_slice %5 {offsets = [0, 0], sizes = [16, 32], strides = [1, 1]} : vector<16x96xf32> to vector<16x32xf32>
    %c0_5 = arith.constant 0 : index
    %c0_6 = arith.constant 0 : index
    %7 = vector.load %arg4[%c0_5, %c0_6] : memref<16x32xf32, #tpu.memory_space<vmem>>, vector<16x32xf32>
    tpu.vector_store %arg4[%c0_5, %c0_6], %6 {strides = array<i32>} : memref<16x32xf32, #tpu.memory_space<vmem>>, vector<16x32xf32>,
    %8 = vector.extract_strided_slice %5 {offsets = [0, 32], sizes = [16, 32], strides = [1, 1]} : vector<16x96xf32> to vector<16x32xf32>
    %c0_7 = arith.constant 0 : index
    %c0_8 = arith.constant 0 : index
    %9 = vector.load %arg5[%c0_7, %c0_8] : memref<16x32xf32, #tpu.memory_space<vmem>>, vector<16x32xf32>
    tpu.vector_store %arg5[%c0_7, %c0_8], %8 {strides = array<i32>} : memref<16x32xf32, #tpu.memory_space<vmem>>, vector<16x32xf32>,
    %10 = vector.extract_strided_slice %5 {offsets = [0, 64], sizes = [16, 32], strides = [1, 1]} : vector<16x96xf32> to vector<16x32xf32>
    %c0_9 = arith.constant 0 : index
    %c0_10 = arith.constant 0 : index
    %11 = vector.load %arg6[%c0_9, %c0_10] : memref<16x32xf32, #tpu.memory_space<vmem>>, vector<16x32xf32>
    tpu.vector_store %arg6[%c0_9, %c0_10], %10 {strides = array<i32>} : memref<16x32xf32, #tpu.memory_space<vmem>>, vector<16x32xf32>,
    return
  }
  func.func @transform_0(%arg0: i32) -> (i32, i32) {
    %c0_i32 = arith.constant 0 : i32
    %c0_i32_0 = arith.constant 0 : i32
    return %arg0, %c0_i32 : i32, i32
  }
  func.func @transform_1(%arg0: i32) -> (i32, i32) {
    %c0_i32 = arith.constant 0 : i32
    %c0_i32_0 = arith.constant 0 : i32
    %c0_i32_1 = arith.constant 0 : i32
    return %c0_i32, %c0_i32_0 : i32, i32
  }
  func.func @transform_2(%arg0: i32) -> (i32, i32) {
    %c0_i32 = arith.constant 0 : i32
    %c0_i32_0 = arith.constant 0 : i32
    %c0_i32_1 = arith.constant 0 : i32
    return %c0_i32, %c0_i32_0 : i32, i32
  }
  func.func @transform_3(%arg0: i32) -> (i32, i32) {
    %c0_i32 = arith.constant 0 : i32
    %c0_i32_0 = arith.constant 0 : i32
    return %arg0, %c0_i32 : i32, i32
  }
  func.func @transform_4(%arg0: i32) -> (i32, i32) {
    %c0_i32 = arith.constant 0 : i32
    %c0_i32_0 = arith.constant 0 : i32
    return %arg0, %c0_i32 : i32, i32
  }
  func.func @transform_5(%arg0: i32) -> (i32, i32) {
    %c0_i32 = arith.constant 0 : i32
    %c0_i32_0 = arith.constant 0 : i32
    return %arg0, %c0_i32 : i32, i32
  }
}

</mosaic_0001>

<bundles_post_ra>
// kernel: tpu_custom_call.1
= control target key start
LH: loop header
LB: loop body
LE: loop exit
PB: predicated region body
PF: predicated region fallthrough
CT: control target
= control target key end

     0   :  { %11 = vsyncpa [#allocation3], 0  ;;  %s498_s0 = inlined_call_operand.hbm [shape: f32[16,32], index: 0, kind: input, shape index: {}]   ;;  %s499_s1 = inlined_call_operand.hbm [shape: f32[32,96], index: 1, kind: input, shape index: {}]   ;;  %s500_s2 = inlined_call_operand.vmem [shape: f32[1,96], index: 2, kind: input, shape index: {}]   ;;  %s501_s3 = inlined_call_operand.hbm [shape: f32[16,32], index: 3, kind: output, shape index: {0}]   ;;  %s502_s4 = inlined_call_operand.hbm [shape: f32[16,32], index: 4, kind: output, shape index: {1}]   ;;  %s503_s5 = inlined_call_operand.hbm [shape: f32[16,32], index: 5, kind: output, shape index: {2}]  }
   0x1   :  { %12 = vsyncpa [#allocation6], 0 }
   0x2   :  { %13 = vsyncpa [#allocation4], 0 }
   0x3   :  { %14 = vsyncpa [#allocation9], 0  ;;  %s366_s18 = smov [#allocation2]   ;;  %s248_s22 = scalar_lea.hbm %s498_s0, 256 }
   0x4   :  { %s20_s19 = sshll.u32 %s366_s18, 4  ;;  %p249_p0 = scmp.ne.s32.totalorder %s498_s0, %s248_s22  ;;  %s21_s19 = int_to_ptr.vmem [resolvable:$true] %s20_s19 }
   0x5   :  { %p252_p1 = scmp.lt.u32.totalorder %s248_s22, %s498_s0 }
   0x7   :  { %p254_p2 = pnand %p252_p1, %p249_p0 }
   0x9   :  { %257 = shalt.err (!%p254_p2)
}
   0xa   :  { %s258_s27 = scalar_lea.vmem %s21_s19, 256  ;;  %p263_p4 = scmp.lt.s32.totalorder %s21_s19, %s21_s19 }
   0xb   :  { %p259_p3 = scmp.ne.s32.totalorder %s21_s19, %s258_s27  ;;  %p264_p5 = scmp.lt.s32.totalorder %s258_s27, %s258_s27 }
   0xd   :  { %p265_p6 = por %p264_p5, %p263_p4 }
   0xf   :  { %p266_p7 = pnand %p265_p6, %p259_p3 }
  0x11   :  { %269 = shalt.err (!%p266_p7)
}
  0x12   :  { %s367_s28 = smov 128   ;;  %s368_s29 = smov 8  }
  0x13   :  { %26 = dma.hbm_to_vmem [thread:$0]  %s498_s0, 256, %s21_s19, [#allocation3], %s367_s28, %s367_s28, %s368_s29  }
  0x14   :  { %s369_s7 = smov [#allocation5]   ;;  %s270_s11 = scalar_lea.hbm %s499_s1, 512 }
  0x15   :  { %s32_s8 = sshll.u32 %s369_s7, 4  ;;  %p271_p8 = scmp.ne.s32.totalorder %s499_s1, %s270_s11  ;;  %s33_s8 = int_to_ptr.vmem [resolvable:$true] %s32_s8 }
  0x16   :  { %p274_p9 = scmp.lt.u32.totalorder %s270_s11, %s499_s1 }
  0x18   :  { %p276_p10 = pnand %p274_p9, %p271_p8 }
  0x1a   :  { %279 = shalt.err (!%p276_p10)
}
  0x1b   :  { %s280_s16 = scalar_lea.vmem %s33_s8, 512  ;;  %p285_p12 = scmp.lt.s32.totalorder %s33_s8, %s33_s8 }
  0x1c   :  { %p281_p11 = scmp.ne.s32.totalorder %s33_s8, %s280_s16  ;;  %p286_p13 = scmp.lt.s32.totalorder %s280_s16, %s280_s16 }
  0x1e   :  { %p287_p0 = por %p286_p13, %p285_p12 }
  0x20   :  { %p288_p1 = pnand %p287_p0, %p281_p11 }
  0x22   :  { %291 = shalt.err (!%p288_p1)
}
  0x23   :  { %38 = dma.hbm_to_vmem [thread:$0]  %s499_s1, 512, %s33_s8, [#allocation6], %s367_s28, %s367_s28, %s368_s29  }
  0x24   :  { %358 = dma.done.wait [#allocation3], 256  }
  0x25   :  { %359 = vsyncadd [#allocation3], 4294967040 }
  0x26   :  { %360 = dma.done.wait [#allocation6], 512  }
  0x27   :  { %361 = vsyncadd [#allocation6], 4294966784  ;;  %vm60_vm0 = vcmask 261120   ;;  %v47_v0 = vld [vmem:[#allocation5] sm:$0xff]  ;;  %v48_v1 = vld [vmem:[#allocation5 + $0x8] sm:$0xff]  ;;  %s370_s19 = smov [#allocation7]  }
  0x28   :  { %v49_v2 = vld [vmem:[#allocation5 + $0x10] sm:$0xff]  ;;  %v231_v3 = vpack.c.bf16 %v48_v1, %v47_v0  ;;  %v50_v4 = vld [vmem:[#allocation5 + $0x18] sm:$0xff]  ;;  %s167_s20 = sshll.u32 %s370_s19, 4  ;;  %s371_s21 = smov 64   ;;  %s168_s20 = int_to_ptr.vmem [resolvable:$true] %s167_s20 }
  0x29   :  { %v51_v5 = vld [vmem:[#allocation2] sm:$0xff]  ;;  %v235_v6 = vpack.c.bf16 %v50_v4, %v49_v2  ;;  %v52_v7 = vld [vmem:[#allocation2 + $0x8] sm:$0xff]  ;;  %s372_s22 = smov 96   ;;  %s292_s23 = scalar_lea.vmem %s168_s20, 256 }
  0x2a   :  { %228 = vmatprep.mubr.msk.f32.mxu0 %vm60_vm0, %v51_v5  ;;  %232 = vmatprep.subr.bf16.mxu0 %v231_v3  ;;  %v211_v8 = vld [vmem:[%s500_s2] ss:$0 sm:$0xff]  ;;  %p293_p2 = scmp.ne.s32.totalorder %s168_s20, %s292_s23  ;;  %p297_p3 = scmp.lt.s32.totalorder %s168_s20, %s168_s20 }
  0x2b   :  { %234 = vmatpush3.bf16.msra.mxu0 %v231_v3  ;;  %p298_p4 = scmp.lt.s32.totalorder %s292_s23, %s292_s23 }
  0x2c   :  { %236 = vmatprep.subr.bf16.mxu0 %v235_v6 }
  0x2d   :  { %p299_p5 = por %p298_p4, %p297_p3 }
  0x2f   :  { %238 = vmatpush3.bf16.msra.mxu0 %v235_v6  ;;  %p300_p6 = pnand %p299_p5, %p293_p2 }
  0x32   :  { %229 = vmatmul.mubr.msk.f32.vlgmr.msra.gmra.mrb[0].mxu0 %vm60_vm0, %v52_v7 }
 0x105   :  { %v230_v9 = vpop.f32.mrb[0].mxu0 }
 0x106   :  { %v139_v10 = vadd.f32 %v230_v9, %v211_v8  ;;  %v133_v11 = vpop.f32.mrb[1].mxu0 }
 0x107   :  { %v134_v12 = vadd.f32 %v211_v8, %v133_v11 }
 0x108   :  { %143 = vst.msk [vmem:[#allocation7 + $0x8] sm:$0xff] %vm60_vm0, %v139_v10 }
 0x109   :  { %142 = vst.msk [vmem:[#allocation7] sm:$0xff] %vm60_vm0, %v134_v12  ;;  %154 = vrot.lane.b32.xlu1 %v134_v12, %s371_s21  ;;  %146 = vrot.lane.b32.xlu0 %v134_v12, %s372_s22 }
 0x10a   :  { %303 = shalt.err (!%p300_p6)
}
 0x10b   :  { %s304_s25 = scalar_lea.hbm %s501_s3, 256 }
 0x10c   :  { %p305_p7 = scmp.ne.s32.totalorder %s501_s3, %s304_s25  ;;  %p308_p8 = scmp.lt.u32.totalorder %s304_s25, %s501_s3 }
 0x10e   :  { %p310_p9 = pnand %p308_p8, %p305_p7 }
 0x110   :  { %313 = shalt.err (!%p310_p9)
}
 0x111   :  { %173 = dma.vmem_to_hbm [thread:$0]  %s168_s20, 256, %s501_s3, [#allocation4], %s367_s28, %s367_s28, %s368_s29  }
 0x112   :  { %156 = vrot.lane.b32.xlu1 %v139_v10, %s371_s21  ;;  %148 = vrot.lane.b32.xlu0 %v139_v10, %s372_s22  ;;  %s373_s9 = smov [#allocation8]   ;;  %s374_s11 = smov [#allocation10]  }
 0x113   :  { %s179_s10 = sshll.u32 %s373_s9, 4  ;;  %s191_s12 = sshll.u32 %s374_s11, 4  ;;  %s180_s10 = int_to_ptr.vmem [resolvable:$true] %s179_s10  ;;  %s459_s12 = int_to_ptr.vmem [resolvable:$true] %s191_s12 }
 0x114   :  { %s314_s3 = scalar_lea.vmem %s180_s10, 256  ;;  %p319_p11 = scmp.lt.s32.totalorder %s180_s10, %s180_s10 }
 0x115   :  { %p315_p10 = scmp.ne.s32.totalorder %s180_s10, %s314_s3  ;;  %p320_p12 = scmp.lt.s32.totalorder %s314_s3, %s314_s3 }
 0x117   :  { %p321_p13 = por %p320_p12, %p319_p11 }
 0x119   :  { %p322_p0 = pnand %p321_p13, %p315_p10 }
 0x17b   :  { %v155_v13 = vpop.permute.xlu1 %154  ;;  %v147_v14 = vpop.permute.xlu0 %146 }
 0x17c   :  { %160 = vst.msk [vmem:[#allocation10] sm:$0xff] %vm60_vm0, %v155_v13  ;;  %152 = vst.msk [vmem:[#allocation8] sm:$0xff] %vm60_vm0, %v147_v14 }
 0x184   :  { %v157_v15 = vpop.permute.xlu1 %156  ;;  %v149_v16 = vpop.permute.xlu0 %148 }
 0x185   :  { %161 = vst.msk [vmem:[#allocation10 + $0x8] sm:$0xff] %vm60_vm0, %v157_v15  ;;  %153 = vst.msk [vmem:[#allocation8 + $0x8] sm:$0xff] %vm60_vm0, %v149_v16 }
 0x186   :  { %325 = shalt.err (!%p322_p0)
}
 0x187   :  { %s326_s15 = scalar_lea.hbm %s502_s4, 256 }
 0x188   :  { %p327_p1 = scmp.ne.s32.totalorder %s502_s4, %s326_s15  ;;  %p330_p2 = scmp.lt.u32.totalorder %s326_s15, %s502_s4 }
 0x18a   :  { %p332_p3 = pnand %p330_p2, %p327_p1 }
 0x18c   :  { %335 = shalt.err (!%p332_p3)
}
 0x18d   :  { %185 = dma.vmem_to_hbm [thread:$0]  %s180_s10, 256, %s502_s4, [#allocation9], %s367_s28, %s367_s28, %s368_s29  }
 0x18e   :  { %s336_s20 = scalar_lea.vmem %s459_s12, 256  ;;  %p341_p5 = scmp.lt.s32.totalorder %s459_s12, %s459_s12 }
 0x18f   :  { %p337_p4 = scmp.ne.s32.totalorder %s459_s12, %s336_s20  ;;  %p342_p6 = scmp.lt.s32.totalorder %s336_s20, %s336_s20 }
 0x191   :  { %p343_p7 = por %p342_p6, %p341_p5 }
 0x193   :  { %p344_p8 = pnand %p343_p7, %p337_p4 }
 0x195   :  { %347 = shalt.err (!%p344_p8)
}
 0x196   :  { %s348_s23 = scalar_lea.hbm %s503_s5, 256 }
 0x197   :  { %p349_p9 = scmp.ne.s32.totalorder %s503_s5, %s348_s23  ;;  %p352_p10 = scmp.lt.u32.totalorder %s348_s23, %s503_s5 }
 0x199   :  { %p354_p11 = pnand %p352_p10, %p349_p9 }
 0x19b   :  { %357 = shalt.err (!%p354_p11)
}
 0x19c   :  { %197 = dma.vmem_to_hbm [thread:$0]  %s459_s12, 256, %s503_s5, [#allocation9], %s367_s28, %s367_s28, %s368_s29  }
 0x19d   :  { %362 = dma.done.wait [#allocation4], 256  }
 0x19e   :  { %363 = vsyncadd [#allocation4], 4294967040 }
 0x19f   :  { %364 = dma.done.wait [#allocation9], 512  }
 0x1a0   :  { %365 = vsyncadd [#allocation9], 4294966784 }
 0x1a1   :  { %207 = vsyncpa [#allocation3], 1 }
 0x1a2   :  { %208 = vsyncpa [#allocation6], 1 }
 0x1a3   :  { %209 = vsyncpa [#allocation4], 1 }
 0x1a4   :  { %210 = vsyncpa [#allocation9], 1 }

</bundles_post_ra>
